<compile_context>
chip_gen: v7x
topology: tpu7x:2x2x1
jax: 0.10.0
libtpu: 0.0.40
codegen_flags: <defaults>
</compile_context>

<pallas_src>
import functools

import jax
import jax.numpy as jnp
from jax.experimental import pallas as pl
from jax.experimental.pallas import tpu as pltpu


def _round_up(x: int, m: int) -> int:
    return ((x + m - 1) // m) * m


def _cdiv(a: int, b: int) -> int:
    return -(-a // b)


def _randfeat_kernel(xt_ref, wt_ref, x0_ref, w0_ref, b_ref, out_ref, *,
                     col_split, d_true, add_features, compute_dtype):
    # In-kernel cast: activations are streamed from HBM in their native dtype and
    # packed to bf16 on the VPU right before the MXU (saves a whole wrapper-side
    # read+write pass over the inputs).
    xt = xt_ref[...].astype(compute_dtype)
    x0 = x0_ref[...].astype(compute_dtype)

    # Fused block-diagonal matmul: Wt/W0 were padded into disjoint, lane-aligned
    # column ranges of (K_i, d_cols) slabs, so both dots accumulate into ONE
    # lane-dense f32 tile.  Scale and bias are already folded into the weights.
    z = jnp.dot(xt, wt_ref[...], preferred_element_type=jnp.float32)
    z = z + jnp.dot(x0, w0_ref[...], preferred_element_type=jnp.float32)
    z = jnp.tanh(z + b_ref[...])          # f32 EUP epilogue (v5e-safe, own VLIW slot)

    if add_features:
        # Ft in cols [0, col_split), F0 in [col_split, 2*col_split); col_split is a
        # multiple of 128 so both slices are lane-aligned — no XLU shifts.
        z = z[:, :col_split] + z[:, col_split:]
    # Store only the logical output width; slice starts at lane 0 so this is just a
    # (possibly masked) store, and it avoids ever writing the padded columns to HBM.
    out_ref[...] = z[:, :d_true].astype(out_ref.dtype)


def prepare_randfeat_params(Wt, bt, W0, b0, *, iid_scale=1.0, add_features=False,
                            compute_dtype=jnp.bfloat16):
    """One-time (module-init) parameter prep: transpose, fold scale, pad, cast."""
    dt, hidden_dim = Wt.shape
    d0, in_dim = W0.shape
    assert dt > 0 and d0 > 0, "kernel expects both random-feature branches"
    # TODO(synk): single-branch variants (randfeat_*_dim == 0) and the data-dependent
    # 'SWIM' fitting path (fit / fit_transform) are not implemented; only the 'iid'
    # forward is kernelized.
    if add_features:
        assert dt == d0, "add_features requires equal feature dims"
        col_split = _round_up(dt, 128)        # F0 starts at a 128-aligned column
        d_cols = 2 * col_split
    else:
        col_split = dt                        # plain concatenation: [Ft | F0]
        d_cols = _round_up(dt + d0, 128)      # pad accumulator to a lane-dense width

    s = jnp.float32(iid_scale)
    wt_p = jnp.zeros((hidden_dim, d_cols), jnp.float32)
    wt_p = wt_p.at[:, :dt].set(Wt.astype(jnp.float32).T * s)
    w0_p = jnp.zeros((in_dim, d_cols), jnp.float32)
    w0_p = w0_p.at[:, col_split:col_split + d0].set(W0.astype(jnp.float32).T * s)
    b_p = jnp.zeros((1, d_cols), jnp.float32)
    b_p = b_p.at[0, :dt].set(bt.astype(jnp.float32) * s)
    b_p = b_p.at[0, col_split:col_split + d0].set(b0.astype(jnp.float32) * s)

    return {
        "wt": wt_p.astype(compute_dtype),     # bf16 MXU operands
        "w0": w0_p.astype(compute_dtype),
        "b": b_p,                             # bias stays f32
        "dt": dt, "d0": d0, "col_split": col_split, "d_cols": d_cols,
        "add_features": bool(add_features),
    }


def randfeat_forward(Xt, X0, params, *, batch_tile=None, out_dtype=jnp.float32):
    """Pallas implementation of RandFeatLayer.forward (iid feature type)."""
    wt, w0, b = params["wt"], params["w0"], params["b"]
    dt, d0 = params["dt"], params["d0"]
    col_split, d_cols = params["col_split"], params["d_cols"]
    add_features = params["add_features"]
    hidden_dim, in_dim = wt.shape[0], w0.shape[0]
    n = Xt.shape[0]
    assert Xt.shape == (n, hidden_dim) and X0.shape == (n, in_dim)
    d_true = dt if add_features else dt + d0          # logical output width
    compute_dtype = wt.dtype

    # ---- Per-generation VMEM budget (v5e/v6e: 128 MiB, v7x: 64 MiB physical). ----
    try:
        vmem_cap = int(getattr(pltpu.get_tpu_info(), "vmem_capacity_bytes", 64 << 20))
    except Exception:
        vmem_cap = 64 << 20                           # conservative (v7x) fallback
    budget = min(32 << 20, max(8 << 20, vmem_cap // 3))

    in_bytes = jnp.dtype(Xt.dtype).itemsize           # activations streamed as-is
    out_bytes = jnp.dtype(out_dtype).itemsize
    k_total = hidden_dim + in_dim
    per_row = (2 * in_bytes * k_total                 # Xt/X0 tiles, double-buffered
               + 2 * out_bytes * d_true               # output tile, double-buffered
               + 2 * k_total                          # in-kernel bf16 cast temporaries
               + 4 * d_cols)                          # f32 pre-activation slab
    const_bytes = 2 * (k_total * d_cols * wt.dtype.itemsize + d_cols * 4)

    # ---- Batch tile: as big as the budget allows (amortizes ~0.35 us/step). ----
    if batch_tile is None:
        tb = (budget - const_bytes) // max(per_row, 1)
        tb = max(8, min(16384, (tb // 8) * 8))
    else:
        tb = max(8, _round_up(batch_tile, 8))
    tb = min(tb, _round_up(n, 8))                     # never exceed the (8-rounded) data
    # Keep grid length >= 4 on large batches so megacore ("parallel") has work for
    # both TensorCores without shrinking tiles into step-overhead territory.
    if n >= 4 * 2048:
        tb = min(tb, _round_up(_cdiv(n, 4), 8))

    grid = _cdiv(n, tb)
    working_set = tb * per_row + const_bytes
    vmem_limit = int(min(max(16 << 20, working_set * 3 // 2),
                         max(16 << 20, vmem_cap - (8 << 20))))

    kernel = functools.partial(_randfeat_kernel, col_split=col_split, d_true=d_true,
                               add_features=add_features, compute_dtype=compute_dtype)

    # Edge-block handling: grid = cdiv(n, tb); Pallas masks the partial last block on
    # writeback, and rows are fully independent, so no host-side padding is needed and
    # no post-kernel slice is taken.  All block last dims equal the full array dims
    # (hidden_dim / in_dim / d_cols / d_true), satisfying the (8,128) rule.
    return pl.pallas_call(
        kernel,
        out_shape=jax.ShapeDtypeStruct((n, d_true), out_dtype),
        grid_spec=pltpu.PrefetchScalarGridSpec(
            num_scalar_prefetch=0,
            grid=(grid,),
            in_specs=[
                pl.BlockSpec((tb, hidden_dim), lambda i: (i, 0)),   # Xt tile (streamed)
                pl.BlockSpec((hidden_dim, d_cols), lambda i: (0, 0)),  # Wt (constant)
                pl.BlockSpec((tb, in_dim), lambda i: (i, 0)),       # X0 tile (streamed)
                pl.BlockSpec((in_dim, d_cols), lambda i: (0, 0)),   # W0 (constant)
                pl.BlockSpec((1, d_cols), lambda i: (0, 0)),        # fused bias
            ],
            out_specs=pl.BlockSpec((tb, d_true), lambda i: (i, 0)),
        ),
        compiler_params=pltpu.CompilerParams(
            dimension_semantics=("parallel",),
            vmem_limit_bytes=vmem_limit,
        ),
    )(Xt, wt, X0, w0, b)


if __name__ == "__main__":
    # Small shapes consistent with the module:
    #   in_dim=16, hidden_dim=32, randfeat_xt_dim=randfeat_x0_dim=32, batch N=8
    N, in_dim, hidden_dim = 8, 16, 32
    randfeat_xt_dim, randfeat_x0_dim = 32, 32
    iid_scale = 0.5

    key = jax.random.PRNGKey(0)
    k_xt, k_x0, k_wt, k_bt, k_w0, k_b0 = jax.random.split(key, 6)

    Xt = jax.random.normal(k_xt, (N, hidden_dim), dtype=jnp.float32)
    X0 = jax.random.normal(k_x0, (N, in_dim), dtype=jnp.float32)

    # Deterministic nn.Linear-style init: U(-1/sqrt(fan_in), 1/sqrt(fan_in))
    bnd_t = 1.0 / (hidden_dim ** 0.5)
    bnd_0 = 1.0 / (in_dim ** 0.5)
    Wt = jax.random.uniform(k_wt, (randfeat_xt_dim, hidden_dim),
                            minval=-bnd_t, maxval=bnd_t, dtype=jnp.float32)
    bt = jax.random.uniform(k_bt, (randfeat_xt_dim,),
                            minval=-bnd_t, maxval=bnd_t, dtype=jnp.float32)
    W0 = jax.random.uniform(k_w0, (randfeat_x0_dim, in_dim),
                            minval=-bnd_0, maxval=bnd_0, dtype=jnp.float32)
    b0 = jax.random.uniform(k_b0, (randfeat_x0_dim,),
                            minval=-bnd_0, maxval=bnd_0, dtype=jnp.float32)

    # --- concat path (add_features=False, PyTorch default) ---
    params = prepare_randfeat_params(Wt, bt, W0, b0,
                                     iid_scale=iid_scale, add_features=False)
    out = jax.block_until_ready(randfeat_forward(Xt, X0, params))
    assert out.shape == (N, randfeat_xt_dim + randfeat_x0_dim)
    assert out.dtype == jnp.float32

    # Reference with the same bf16 operand rounding as the kernel's MXU path.
    def _bf(x):
        return x.astype(jnp.bfloat16).astype(jnp.float32)

    ft_ref = jnp.tanh(_bf(Xt) @ _bf(Wt.T * iid_scale) + bt * iid_scale)
    f0_ref = jnp.tanh(_bf(X0) @ _bf(W0.T * iid_scale) + b0 * iid_scale)
    ref = jnp.concatenate([ft_ref, f0_ref], axis=1)
    assert jnp.allclose(out, ref, atol=2e-3, rtol=2e-3), \
        float(jnp.max(jnp.abs(out - ref)))

    # Loose check against the exact f32 PyTorch-equivalent math.
    ref_f32 = jnp.concatenate([
        jnp.tanh((Xt @ Wt.T + bt) * iid_scale),
        jnp.tanh((X0 @ W0.T + b0) * iid_scale),
    ], axis=1)
    assert jnp.allclose(out, ref_f32, atol=5e-2), \
        float(jnp.max(jnp.abs(out - ref_f32)))

    # --- add_features=True path ---
    params_add = prepare_randfeat_params(Wt, bt, W0, b0,
                                         iid_scale=iid_scale, add_features=True)
    out_add = jax.block_until_ready(randfeat_forward(Xt, X0, params_add))
    assert out_add.shape == (N, randfeat_xt_dim)
    ref_add = ft_ref + f0_ref
    assert jnp.allclose(out_add, ref_add, atol=4e-3, rtol=4e-3), \
        float(jnp.max(jnp.abs(out_add - ref_add)))

    # --- non-multiple batch (exercises cdiv edge-block masking, no host padding) ---
    N2 = 13
    Xt2 = jax.random.normal(jax.random.PRNGKey(1), (N2, hidden_dim), dtype=jnp.float32)
    X02 = jax.random.normal(jax.random.PRNGKey(2), (N2, in_dim), dtype=jnp.float32)
    out2 = jax.block_until_ready(randfeat_forward(Xt2, X02, params, batch_tile=8))
    ref2 = jnp.concatenate([
        jnp.tanh(_bf(Xt2) @ _bf(Wt.T * iid_scale) + bt * iid_scale),
        jnp.tanh(_bf(X02) @ _bf(W0.T * iid_scale) + b0 * iid_scale),
    ], axis=1)
    assert out2.shape == (N2, randfeat_xt_dim + randfeat_x0_dim)
    assert jnp.allclose(out2, ref2, atol=2e-3, rtol=2e-3), \
        float(jnp.max(jnp.abs(out2 - ref2)))

    print("KERNEL_OK")
</pallas_src>

<mosaic_0001>
module attributes {stable_mosaic.version = 11 : i64} {
  func.func @_randfeat_kernel(%arg0: i32, %arg1: memref<8x32xf32, #tpu.memory_space<vmem>>, %arg2: memref<32x128xbf16, #tpu.memory_space<vmem>>, %arg3: memref<8x16xf32, #tpu.memory_space<vmem>>, %arg4: memref<16x128xbf16, #tpu.memory_space<vmem>>, %arg5: memref<1x128xf32, #tpu.memory_space<vmem>>, %arg6: memref<8x64xf32, #tpu.memory_space<vmem>>) attributes {dimension_semantics = [#tpu.dimension_semantics<parallel>], iteration_bounds = array<i64: 1>, scalar_prefetch = 0 : i64, scratch_operands = 0 : i64, tpu.core_type = #tpu.core_type<tc>, window_params = [{transform_indices = @transform_0, window_bounds = array<i64: 8, 32>}, {pipeline_mode = #tpu.pipeline_mode<synchronous>, transform_indices = @transform_1, window_bounds = array<i64: 32, 128>}, {transform_indices = @transform_2, window_bounds = array<i64: 8, 16>}, {pipeline_mode = #tpu.pipeline_mode<synchronous>, transform_indices = @transform_3, window_bounds = array<i64: 16, 128>}, {pipeline_mode = #tpu.pipeline_mode<synchronous>, transform_indices = @transform_4, window_bounds = array<i64: 1, 128>}, {transform_indices = @transform_5, window_bounds = array<i64: 8, 64>}]} {
    %c0 = arith.constant 0 : index
    %c0_0 = arith.constant 0 : index
    %0 = vector.load %arg1[%c0, %c0_0] : memref<8x32xf32, #tpu.memory_space<vmem>>, vector<8x32xf32>
    %1 = arith.truncf %0 : vector<8x32xf32> to vector<8x32xbf16>
    %c0_1 = arith.constant 0 : index
    %c0_2 = arith.constant 0 : index
    %2 = vector.load %arg3[%c0_1, %c0_2] : memref<8x16xf32, #tpu.memory_space<vmem>>, vector<8x16xf32>
    %3 = arith.truncf %2 : vector<8x16xf32> to vector<8x16xbf16>
    %c0_3 = arith.constant 0 : index
    %c0_4 = arith.constant 0 : index
    %4 = vector.load %arg2[%c0_3, %c0_4] : memref<32x128xbf16, #tpu.memory_space<vmem>>, vector<32x128xbf16>
    %cst = arith.constant dense<0.000000e+00> : vector<8x128xf32>
    %5 = tpu.matmul %1, %4, %cst {dimension_numbers = #tpu.dot_dimension_numbers<[1], [0], [0], [1], [0, 0, 1, 1], [], []>} : vector<8x32xbf16>, vector<32x128xbf16>, vector<8x128xf32> -> vector<8x128xf32>
    %c0_5 = arith.constant 0 : index
    %c0_6 = arith.constant 0 : index
    %6 = vector.load %arg4[%c0_5, %c0_6] : memref<16x128xbf16, #tpu.memory_space<vmem>>, vector<16x128xbf16>
    %cst_7 = arith.constant dense<0.000000e+00> : vector<8x128xf32>
    %7 = tpu.matmul %3, %6, %cst_7 {dimension_numbers = #tpu.dot_dimension_numbers<[1], [0], [0], [1], [0, 0, 1, 1], [], []>} : vector<8x16xbf16>, vector<16x128xbf16>, vector<8x128xf32> -> vector<8x128xf32>
    %8 = arith.addf %5, %7 : vector<8x128xf32>
    %c0_8 = arith.constant 0 : index
    %c0_9 = arith.constant 0 : index
    %9 = vector.load %arg5[%c0_8, %c0_9] : memref<1x128xf32, #tpu.memory_space<vmem>>, vector<1x128xf32>
    %10 = vector.broadcast %9 : vector<1x128xf32> to vector<8x128xf32>
    %11 = arith.addf %8, %10 : vector<8x128xf32>
    %12 = math.tanh %11 : vector<8x128xf32>
    %13 = vector.extract_strided_slice %12 {offsets = [0, 0], sizes = [8, 64], strides = [1, 1]} : vector<8x128xf32> to vector<8x64xf32>
    %c0_10 = arith.constant 0 : index
    %c0_11 = arith.constant 0 : index
    %14 = vector.load %arg6[%c0_10, %c0_11] : memref<8x64xf32, #tpu.memory_space<vmem>>, vector<8x64xf32>
    tpu.vector_store %arg6[%c0_10, %c0_11], %13 {strides = array<i32>} : memref<8x64xf32, #tpu.memory_space<vmem>>, vector<8x64xf32>,
    return
  }
  func.func @transform_0(%arg0: i32) -> (i32, i32) {
    %c0_i32 = arith.constant 0 : i32
    %c0_i32_0 = arith.constant 0 : i32
    return %arg0, %c0_i32 : i32, i32
  }
  func.func @transform_1(%arg0: i32) -> (i32, i32) {
    %c0_i32 = arith.constant 0 : i32
    %c0_i32_0 = arith.constant 0 : i32
    %c0_i32_1 = arith.constant 0 : i32
    return %c0_i32, %c0_i32_0 : i32, i32
  }
  func.func @transform_2(%arg0: i32) -> (i32, i32) {
    %c0_i32 = arith.constant 0 : i32
    %c0_i32_0 = arith.constant 0 : i32
    return %arg0, %c0_i32 : i32, i32
  }
  func.func @transform_3(%arg0: i32) -> (i32, i32) {
    %c0_i32 = arith.constant 0 : i32
    %c0_i32_0 = arith.constant 0 : i32
    %c0_i32_1 = arith.constant 0 : i32
    return %c0_i32, %c0_i32_0 : i32, i32
  }
  func.func @transform_4(%arg0: i32) -> (i32, i32) {
    %c0_i32 = arith.constant 0 : i32
    %c0_i32_0 = arith.constant 0 : i32
    %c0_i32_1 = arith.constant 0 : i32
    return %c0_i32, %c0_i32_0 : i32, i32
  }
  func.func @transform_5(%arg0: i32) -> (i32, i32) {
    %c0_i32 = arith.constant 0 : i32
    %c0_i32_0 = arith.constant 0 : i32
    return %arg0, %c0_i32 : i32, i32
  }
}

</mosaic_0001>

<bundles_post_ra>
// kernel: tpu_custom_call.1
= control target key start
LH: loop header
LB: loop body
LE: loop exit
PB: predicated region body
PF: predicated region fallthrough
CT: control target
= control target key end

     0   :  { %10 = vsyncpa [#allocation3], 0  ;;  %s426_s0 = inlined_call_operand.hbm [shape: f32[8,32], index: 0, kind: input, shape index: {}]   ;;  %s427_s1 = inlined_call_operand.hbm [shape: bf16[32,128], index: 1, kind: input, shape index: {}]   ;;  %s428_s2 = inlined_call_operand.hbm [shape: f32[8,16], index: 2, kind: input, shape index: {}]   ;;  %s429_s3 = inlined_call_operand.vmem [shape: bf16[16,128], index: 3, kind: input, shape index: {}]   ;;  %s430_s4 = inlined_call_operand.vmem [shape: f32[1,128], index: 4, kind: input, shape index: {}]   ;;  %s431_s5 = inlined_call_operand.hbm [shape: f32[8,64], index: 5, kind: output, shape index: {}]  }
   0x1   :  { %11 = vsyncpa [#allocation6], 0 }
   0x2   :  { %12 = vsyncpa [#allocation4], 0  ;;  %s334_s18 = smov [#allocation5]   ;;  %s240_s22 = scalar_lea.hbm %s427_s1, 256 }
   0x3   :  { %s28_s19 = sshll.u32 %s334_s18, 4  ;;  %p241_p0 = scmp.ne.s32.totalorder %s427_s1, %s240_s22  ;;  %s29_s19 = int_to_ptr.vmem [resolvable:$true] %s28_s19 }
   0x4   :  { %p244_p1 = scmp.lt.u32.totalorder %s240_s22, %s427_s1 }
   0x6   :  { %p246_p2 = pnand %p244_p1, %p241_p0 }
   0x8   :  { %249 = shalt.err (!%p246_p2)
}
   0x9   :  { %s250_s27 = scalar_lea.vmem %s29_s19, 256  ;;  %p255_p4 = scmp.lt.s32.totalorder %s29_s19, %s29_s19 }
   0xa   :  { %p251_p3 = scmp.ne.s32.totalorder %s29_s19, %s250_s27  ;;  %p256_p5 = scmp.lt.s32.totalorder %s250_s27, %s250_s27 }
   0xc   :  { %p257_p6 = por %p256_p5, %p255_p4 }
   0xe   :  { %p258_p7 = pnand %p257_p6, %p251_p3 }
  0x10   :  { %261 = shalt.err (!%p258_p7)
}
  0x11   :  { %s335_s28 = smov 64   ;;  %s336_s29 = smov 4  }
  0x12   :  { %34 = dma.hbm_to_vmem [thread:$0]  %s427_s1, 256, %s29_s19, [#allocation6], %s335_s28, %s335_s28, %s336_s29  }
  0x13   :  { %s337_s7 = smov [#allocation2]   ;;  %s338_s9 = smov [#allocation7]  }
  0x14   :  { %s19_s8 = sshll.u32 %s337_s7, 4  ;;  %s41_s10 = sshll.u32 %s338_s9, 4  ;;  %s20_s8 = int_to_ptr.vmem [resolvable:$true] %s19_s8  ;;  %s42_s10 = int_to_ptr.vmem [resolvable:$true] %s41_s10 }
  0x15   :  { %s262_s13 = scalar_lea.hbm %s426_s0, 128 }
  0x16   :  { %p263_p8 = scmp.ne.s32.totalorder %s426_s0, %s262_s13  ;;  %p266_p9 = scmp.lt.u32.totalorder %s262_s13, %s426_s0 }
  0x18   :  { %p268_p10 = pnand %p266_p9, %p263_p8 }
  0x1a   :  { %271 = shalt.err (!%p268_p10)
}
  0x1b   :  { %s272_s1 = scalar_lea.vmem %s20_s8, 128  ;;  %p277_p12 = scmp.lt.s32.totalorder %s20_s8, %s20_s8 }
  0x1c   :  { %p273_p11 = scmp.ne.s32.totalorder %s20_s8, %s272_s1  ;;  %p278_p13 = scmp.lt.s32.totalorder %s272_s1, %s272_s1 }
  0x1e   :  { %p279_p0 = por %p278_p13, %p277_p12 }
  0x20   :  { %p280_p1 = pnand %p279_p0, %p273_p11 }
  0x22   :  { %283 = shalt.err (!%p280_p1)
}
  0x23   :  { %22 = dma.hbm_to_vmem [thread:$0]  %s426_s0, 128, %s20_s8, [#allocation3]  }
  0x24   :  { %s284_s22 = scalar_lea.hbm %s428_s2, 128 }
  0x25   :  { %p285_p2 = scmp.ne.s32.totalorder %s428_s2, %s284_s22  ;;  %p288_p3 = scmp.lt.u32.totalorder %s284_s22, %s428_s2 }
  0x27   :  { %p290_p4 = pnand %p288_p3, %p285_p2 }
  0x29   :  { %293 = shalt.err (!%p290_p4)
}
  0x2a   :  { %s294_s27 = scalar_lea.vmem %s42_s10, 128  ;;  %p299_p6 = scmp.lt.s32.totalorder %s42_s10, %s42_s10 }
  0x2b   :  { %p295_p5 = scmp.ne.s32.totalorder %s42_s10, %s294_s27  ;;  %p300_p7 = scmp.lt.s32.totalorder %s294_s27, %s294_s27 }
  0x2d   :  { %p301_p8 = por %p300_p7, %p299_p6 }
  0x2f   :  { %p302_p9 = pnand %p301_p8, %p295_p5 }
  0x31   :  { %305 = shalt.err (!%p302_p9)
}
  0x32   :  { %44 = dma.hbm_to_vmem [thread:$0]  %s428_s2, 128, %s42_s10, [#allocation6]  }
  0x33   :  { %328 = dma.done.wait [#allocation3], 128  }
  0x34   :  { %329 = vsyncadd [#allocation3], 4294967168 }
  0x35   :  { %330 = dma.done.wait [#allocation6], 384  }
  0x36   :  { %331 = vsyncadd [#allocation6], 4294966912  ;;  %v339_v0 = vmov 0.0   ;;  %vm340_vm0 = vmmov 0   ;;  %v235_v1 = vld [vmem:[#allocation5] sm:$0xff]   ;;  %v236_v2 = vld [vmem:[%s429_s3] sm:$0xff]  }
  0x37   :  { %219 = vmatprep.subr.bf16.mxu1 %v339_v0  ;;  %213 = vmatprep.subr.bf16.mxu0 %v339_v0  ;;  %v61_v3 = vld [vmem:[#allocation7] sm:$0xff]  ;;  %vm75_vm1 = vcmask 130048   ;;  %v237_v5 = vld [vmem:[#allocation5 + $0x8] sm:$0xff]   ;;  %v59_v6 = vld [vmem:[#allocation2] sm:$0xff]  ;;  %vm131_vm2 = vcmask 261120   ;;  %s341_s6 = smov [#allocation8]  }
  0x38   :  { %215 = vmatprep.mubr.msk.bf16.mxu0 %vm340_vm0, %v339_v0  ;;  %223 = vmatprep.mubr.msk.bf16.mxu1 %vm340_vm0, %v339_v0  ;;  %v62_v4 = vpack.c.bf16 %v61_v3, %v61_v3  ;;  %v60_v7 = vpack.c.bf16 %v59_v6, %v59_v6  ;;  %v207_v13 = vld [vmem:[%s430_s4] ss:$0 sm:$0xff]  ;;  %s192_s7 = sshll.u32 %s341_s6, 4  ;;  %vm184_vm3 = vcmask 523264   ;;  %s193_s7 = int_to_ptr.vmem [resolvable:$true] %s192_s7 }
  0x39   :  { %220 = vmatpush3.bf16.msra.mxu1 %v235_v1  ;;  %214 = vmatpush3.bf16.msra.mxu0 %v236_v2  ;;  %s306_s8 = scalar_lea.vmem %s193_s7, 128  ;;  %p311_p11 = scmp.lt.s32.totalorder %s193_s7, %s193_s7 }
  0x3a   :  { %221 = vmatprep.subr.bf16.mxu1 %v339_v0  ;;  %p307_p10 = scmp.ne.s32.totalorder %s193_s7, %s306_s8  ;;  %p312_p12 = scmp.lt.s32.totalorder %s306_s8, %s306_s8 }
  0x3c   :  { %216 = vmatmul.mubr.msk.bf16.vlgmr.msra.gmra.mrb[0].mxu0 %vm75_vm1, %v62_v4  ;;  %p313_p13 = por %p312_p12, %p311_p11 }
  0x3d   :  { %222 = vmatpush3.bf16.msra.mxu1 %v237_v5 }
  0x3e   :  { %p314_p0 = pnand %p313_p13, %p307_p10 }
  0x40   :  { %224 = vmatmul.mubr.msk.bf16.vlgmr.msra.gmra.mrb[0].mxu1 %vm131_vm2, %v60_v7 }
 0x10f   :  { %v113_v8 = vpop.f32.mrb[0].mxu0 }
 0x110   :  { %v217_v9 = vpop.f32.mrb[1].mxu0 }
 0x111   :  { %v116_v10 = vpop.f32.mrb[2].mxu0 }
 0x112   :  { %v218_v11 = vpop.f32.mrb[3].mxu0 }
 0x113   :  { %v169_v12 = vpop.f32.mrb[0].mxu1 }
 0x114   :  { %v170_v14 = vadd.f32 %v169_v12, %v113_v8  ;;  %v225_v15 = vpop.f32.mrb[1].mxu1 }
 0x115   :  { %v172_v16 = vpop.f32.mrb[2].mxu1 }
 0x116   :  { %v182_v17 = vadd.f32 %v207_v13, %v170_v14  ;;  %v226_v18 = vpop.f32.mrb[3].mxu1 }
 0x118   :  { %238 = vtanh.f32 %v182_v17 }
 0x122   :  { %v239_v19 = vpop.eup %238 }
 0x123   :  { %185 = vst.msk [vmem:[#allocation8] sm:$0xff] %vm184_vm3, %v239_v19 }
 0x124   :  { %317 = shalt.err (!%p314_p0)
}
 0x125   :  { %s318_s10 = scalar_lea.hbm %s431_s5, 128 }
 0x126   :  { %p319_p1 = scmp.ne.s32.totalorder %s431_s5, %s318_s10  ;;  %p322_p2 = scmp.lt.u32.totalorder %s318_s10, %s431_s5 }
 0x128   :  { %p324_p3 = pnand %p322_p2, %p319_p1 }
 0x12a   :  { %327 = shalt.err (!%p324_p3)
}
 0x12b   :  { %195 = dma.vmem_to_hbm [thread:$0]  %s193_s7, 128, %s431_s5, [#allocation4]  }
 0x12c   :  { %332 = dma.done.wait [#allocation4], 128  }
 0x12d   :  { %333 = vsyncadd [#allocation4], 4294967168 }
 0x12e   :  { %199 = vsyncpa [#allocation3], 1 }
 0x12f   :  { %200 = vsyncpa [#allocation6], 1 }
 0x130   :  { %201 = vsyncpa [#allocation4], 1 }

</bundles_post_ra>
